<compile_context>
chip_gen: v7x
topology: tpu7x:2x2x1
jax: 0.10.0
libtpu: 0.0.40
codegen_flags: <defaults>
</compile_context>

<pallas_src>
import math
import functools

import jax
import jax.numpy as jnp
from jax.experimental import pallas as pl
from jax.experimental.pallas import tpu as pltpu


# ---------------------------------------------------------------------------
# Kernels (flash-style: grid = (batch-block, q-tile, kv-tile))
# ---------------------------------------------------------------------------
def _finalize(acc_sc, l_sc, o_ref):
    l = l_sc[...]
    inv = pl.reciprocal(l, approx=True)        # EUP slot, off the VALU path
    inv = inv * (2.0 - l * inv)                # one Newton step -> ~f32 accuracy
    o_ref[...] = (acc_sc[...] * inv).astype(o_ref.dtype)


def _online_softmax_update(s, v, m_sc, l_sc, acc_sc, compute_dtype):
    """One flash step: s is the f32 (Bb,Tq,Tk) score tile, v the value tile."""
    m_new = jnp.maximum(m_sc[...], jnp.max(s, axis=-1, keepdims=True))
    alpha = jnp.exp(m_sc[...] - m_new)
    p = jnp.exp(s - m_new)
    l_sc[...] = alpha * l_sc[...] + jnp.sum(p, axis=-1, keepdims=True)
    acc_sc[...] = alpha * acc_sc[...] + jnp.einsum(
        "bqk,bkd->bqd", p.astype(compute_dtype), v,
        preferred_element_type=jnp.float32)
    m_sc[...] = m_new


def _af_flash_kernel(q_ref, c_ref, o_ref, m_sc, l_sc, acc_sc, *, scale):
    # q_ref: (Bb, Tq, D); c_ref: (Bb, Tk, D) (serves as both K and V).
    kv = pl.program_id(2)

    @pl.when(kv == 0)
    def _init():
        m_sc[...] = jnp.full(m_sc.shape, -jnp.inf, dtype=m_sc.dtype)
        l_sc[...] = jnp.zeros(l_sc.shape, dtype=l_sc.dtype)
        acc_sc[...] = jnp.zeros(acc_sc.shape, dtype=acc_sc.dtype)

    q = q_ref[...]
    c = c_ref[...]
    # Matmul in the input dtype (bf16 stays bf16) with f32 accumulation; the
    # 1/sqrt(D) scale is applied to the f32 scores (matches the reference).
    s = jnp.einsum("bqd,bkd->bqk", q, c,
                   preferred_element_type=jnp.float32) * scale
    _online_softmax_update(s, c, m_sc, l_sc, acc_sc, c.dtype)

    @pl.when(kv == pl.num_programs(2) - 1)
    def _fin():
        _finalize(acc_sc, l_sc, o_ref)


def _af_proj_flash_kernel(q_ref, c_ref, wq_ref, bq_ref, wk_ref, bk_ref,
                          wv_ref, bv_ref, o_ref,
                          q_sc, m_sc, l_sc, acc_sc, *, scale):
    # q_ref: (Bb, Tq, E); c_ref: (Bb, Tk, I); weights (in,out), biases (1,out).
    kv = pl.program_id(2)
    Bb, Tq, E = q_sc.shape
    _, Tk, I = c_ref.shape
    cdt = q_sc.dtype                      # compute dtype == input dtype

    @pl.when(kv == 0)
    def _init():
        m_sc[...] = jnp.full(m_sc.shape, -jnp.inf, dtype=m_sc.dtype)
        l_sc[...] = jnp.zeros(l_sc.shape, dtype=l_sc.dtype)
        acc_sc[...] = jnp.zeros(acc_sc.shape, dtype=acc_sc.dtype)
        # Q projection once per (batch, q-tile): big-M matmul on the flattened
        # batch (free relayout while Tq is a multiple of 8 / the full dim).
        qp = jnp.dot(q_ref[...].reshape(Bb * Tq, E), wq_ref[...],
                     preferred_element_type=jnp.float32) + bq_ref[...]
        q_sc[...] = qp.astype(cdt).reshape(Bb, Tq, E)

    # K / V projections of the current confounder tile.  Two separate dots:
    # avoids a lane-unaligned slice at column E when E % 128 != 0 and avoids a
    # per-call weight concat in the wrapper.
    c2 = c_ref[...].reshape(Bb * Tk, I)
    k = (jnp.dot(c2, wk_ref[...], preferred_element_type=jnp.float32)
         + bk_ref[...]).astype(cdt).reshape(Bb, Tk, E)
    v = (jnp.dot(c2, wv_ref[...], preferred_element_type=jnp.float32)
         + bv_ref[...]).astype(cdt).reshape(Bb, Tk, E)

    s = jnp.einsum("bqd,bkd->bqk", q_sc[...], k,
                   preferred_element_type=jnp.float32) * scale
    # TODO(synk): training-mode Dropout(0.1) would be applied to the softmax
    # weights here; eval mode is the identity.
    _online_softmax_update(s, v, m_sc, l_sc, acc_sc, cdt)

    @pl.when(kv == pl.num_programs(2) - 1)
    def _fin():
        _finalize(acc_sc, l_sc, o_ref)


# ---------------------------------------------------------------------------
# Tile sizing / VMEM budgeting
# ---------------------------------------------------------------------------
def _pad_lane(d):
    return max(-(-d // 128) * 128, 128)


def _vmem_budget():
    cap = 64 * 1024 * 1024            # conservative default: v7x per-TC VMEM
    try:
        cap = int(pltpu.get_tpu_info().vmem_capacity_bytes)
    except Exception:
        pass
    # (tile-sizing budget, explicit scoped-VMEM limit with headroom)
    return int(cap * 0.5), int(cap * 0.85)


def _vmem_bytes_noproj(bb, tq, tk, D, itemsize):
    Dp = _pad_lane(D)
    io = 2 * (bb * tq * Dp + bb * tk * Dp + bb * tq * Dp) * itemsize  # dbl-buf blocks
    scratch = (2 * bb * tq * 128 + bb * tq * Dp) * 4                  # m, l, acc
    tmp = 3 * bb * tq * _pad_lane(tk) * 4                             # s, p (+slack)
    return io + scratch + tmp


def _vmem_bytes_proj(bb, tq, tk, I, E, itemsize, w_itemsize):
    Ip, Ep = _pad_lane(I), _pad_lane(E)
    io = 2 * (bb * tq * Ep + bb * tk * Ip + bb * tq * Ep) * itemsize
    weights = (E * Ep + 2 * I * Ep + 3 * Ep) * w_itemsize             # single-buffered
    scratch = bb * tq * Ep * itemsize + (2 * bb * tq * 128 + bb * tq * Ep) * 4
    tmp = (3 * bb * tq * _pad_lane(tk) + 2 * bb * tk * Ep + bb * tq * Ep) * 4
    return io + weights + scratch + tmp


def _divisors_desc(n, align=None):
    return [d for d in range(n, 0, -1)
            if n % d == 0 and (align is None or d == n or d % align == 0)]


def _choose_blocks(B, Nq, Nk, bytes_fn, budget):
    # 1) Batch block: aim for >= min(B, 4) batch grid steps so the pipeline
    #    actually overlaps DMA with compute (and both v7x TCs get work).
    target_steps = min(B, 4)
    bb = next((d for d in _divisors_desc(B) if B // d >= target_steps), 1)
    tq, tk = Nq, Nk

    def fits(b, q, k):
        return bytes_fn(b, q, k) <= budget

    # 2) Shrink until the per-step working set fits the VMEM budget:
    #    batch first, then the kv (flash) axis, then the q axis (q splits cost
    #    extra confounder re-streaming, so they come last).
    for cand in _divisors_desc(bb):
        bb = cand
        if fits(bb, tq, tk):
            break
    if not fits(bb, tq, tk):
        for cand in _divisors_desc(Nk, 8):
            tk = cand
            if fits(bb, tq, tk):
                break
    if not fits(bb, tq, tk):
        for cand in _divisors_desc(Nq, 8):
            tq = cand
            if fits(bb, tq, tk):
                break
    # 3) v7x: make sure the parallel part of the grid has >= 2 steps when the
    #    batch alone cannot provide them (only possible if Nq is splittable).
    if (B // bb) * (Nq // tq) < 2:
        for cand in _divisors_desc(Nq, 8):
            if Nq // cand >= 2 and fits(bb, cand, tk):
                tq = cand
                break
    return bb, tq, tk


# ---------------------------------------------------------------------------
# Wrapper
# ---------------------------------------------------------------------------
def bd_intervention(feature, confounder, params=None, proj=False,
                    batch_block=None, q_block=None, kv_block=None):
    """feature: (B, Nq, Dq); confounder: (B, Nk, Dk). Returns attention output.

    proj=True expects params = (wq, bq, wk, bk, wv, bv) with weights stored
    transposed (in, out) and biases shaped (1, out).
    """
    B, Nq, Dq = feature.shape
    Bk, Nk, Dk = confounder.shape
    assert B == Bk
    scale = 1.0 / math.sqrt(Dq)               # torch: / math.sqrt(q.size(-1))
    out_dtype = feature.dtype
    itemsize = jnp.dtype(feature.dtype).itemsize

    budget, vmem_limit = _vmem_budget()
    cparams = pltpu.CompilerParams(
        dimension_semantics=("parallel", "parallel", "arbitrary"),
        vmem_limit_bytes=vmem_limit)

    def finalize_blocks(bb, tq, tk):
        if batch_block is not None:
            bb = batch_block
        if q_block is not None:
            tq = q_block
        if kv_block is not None:
            tk = kv_block
        assert B % bb == 0 and Nq % tq == 0 and Nk % tk == 0
        assert tq == Nq or tq % 8 == 0
        assert tk == Nk or tk % 8 == 0
        return bb, tq, tk, (B // bb, Nq // tq, Nk // tk)

    if not proj:
        assert Dq == Dk, "proj=False requires matching feature dims"
        bytes_fn = lambda b, q, k: _vmem_bytes_noproj(b, q, k, Dq, itemsize)
        bb, tq, tk = _choose_blocks(B, Nq, Nk, bytes_fn, budget)
        bb, tq, tk, grid = finalize_blocks(bb, tq, tk)
        kernel = functools.partial(_af_flash_kernel, scale=scale)
        return pl.pallas_call(
            kernel,
            out_shape=jax.ShapeDtypeStruct((B, Nq, Dq), out_dtype),
            grid_spec=pltpu.PrefetchScalarGridSpec(
                num_scalar_prefetch=0,
                grid=grid,
                in_specs=[
                    pl.BlockSpec((bb, tq, Dq), lambda b, qi, kv: (b, qi, 0)),
                    pl.BlockSpec((bb, tk, Dk), lambda b, qi, kv: (b, kv, 0)),
                ],
                out_specs=pl.BlockSpec((bb, tq, Dq),
                                       lambda b, qi, kv: (b, qi, 0)),
                scratch_shapes=[
                    pltpu.VMEM((bb, tq, 1), jnp.float32),    # running max
                    pltpu.VMEM((bb, tq, 1), jnp.float32),    # running sum
                    pltpu.VMEM((bb, tq, Dq), jnp.float32),   # output accumulator
                ],
            ),
            compiler_params=cparams,
        )(feature, confounder)

    # proj=True path: the three Linear layers run inside the kernel.
    wq, bq, wk, bk, wv, bv = params
    E = wq.shape[1]
    I = wk.shape[0]
    assert Dq == E and Dk == I
    w_itemsize = jnp.dtype(wq.dtype).itemsize
    bytes_fn = lambda b, q, k: _vmem_bytes_proj(b, q, k, I, E, itemsize,
                                                w_itemsize)
    bb, tq, tk = _choose_blocks(B, Nq, Nk, bytes_fn, budget)
    bb, tq, tk, grid = finalize_blocks(bb, tq, tk)
    kernel = functools.partial(_af_proj_flash_kernel, scale=scale)

    def call(weight_mode):
        def wspec(shape):
            if weight_mode is None:
                return pl.BlockSpec(shape, lambda b, qi, kv: (0, 0))
            return pl.BlockSpec(shape, lambda b, qi, kv: (0, 0),
                                pipeline_mode=weight_mode)
        return pl.pallas_call(
            kernel,
            out_shape=jax.ShapeDtypeStruct((B, Nq, E), out_dtype),
            grid_spec=pltpu.PrefetchScalarGridSpec(
                num_scalar_prefetch=0,
                grid=grid,
                in_specs=[
                    pl.BlockSpec((bb, tq, E), lambda b, qi, kv: (b, qi, 0)),
                    pl.BlockSpec((bb, tk, I), lambda b, qi, kv: (b, kv, 0)),
                    wspec((E, E)), wspec((1, E)),
                    wspec((I, E)), wspec((1, E)),
                    wspec((I, E)), wspec((1, E)),
                ],
                out_specs=pl.BlockSpec((bb, tq, E),
                                       lambda b, qi, kv: (b, qi, 0)),
                scratch_shapes=[
                    pltpu.VMEM((bb, tq, E), feature.dtype),  # projected q
                    pltpu.VMEM((bb, tq, 1), jnp.float32),    # running max
                    pltpu.VMEM((bb, tq, 1), jnp.float32),    # running sum
                    pltpu.VMEM((bb, tq, E), jnp.float32),    # output accumulator
                ],
            ),
            compiler_params=cparams,
        )(feature, confounder, wq, bq, wk, bk, wv, bv)

    try:
        # Weight/bias blocks never change across grid steps -> single-buffer
        # them (halves their VMEM footprint; matters most on v7x's 64 MiB).
        return call(pl.Buffered(1))
    except Exception:
        # Fallback if this jax build rejects pipeline_mode / Buffered(1).
        return call(None)


# Pure-JAX reference for sanity checks.
def _ref(feature, confounder, params=None, proj=False):
    scale = 1.0 / math.sqrt(feature.shape[-1])
    if proj:
        wq, bq, wk, bk, wv, bv = params
        q = feature @ wq + bq
        k = confounder @ wk + bk
        v = confounder @ wv + bv
    else:
        q, k, v = feature, confounder, confounder
    s = jnp.einsum("bqd,bkd->bqk", q, k) * scale
    p = jax.nn.softmax(s, axis=-1)
    return jnp.einsum("bqk,bkd->bqd", p, v)


if __name__ == "__main__":
    key = jax.random.PRNGKey(0)
    kf, kc, k1, k2, k3, k4, k5, k6 = jax.random.split(key, 8)
    input_dim, embed_dim = 32, 32

    def make_params(dtype):
        def mk(k, shape):
            return (jax.random.normal(k, shape, jnp.float32) * 0.05).astype(dtype)
        return (mk(k1, (embed_dim, embed_dim)), mk(k2, (1, embed_dim)),
                mk(k3, (input_dim, embed_dim)), mk(k4, (1, embed_dim)),
                mk(k5, (input_dim, embed_dim)), mk(k6, (1, embed_dim)))

    def check(out, ref, tol, name):
        out = jax.block_until_ready(out)
        err = float(jnp.max(jnp.abs(out.astype(jnp.float32)
                                    - ref.astype(jnp.float32))))
        assert err < tol, f"{name} mismatch: max abs err {err}"

    # --- small shapes consistent with the module (single kv block) ---
    B, Nq, Nk = 2, 8, 8
    feature = jax.random.normal(kf, (B, Nq, embed_dim), jnp.float32)
    confounder = jax.random.normal(kc, (B, Nk, input_dim), jnp.float32)
    params = make_params(jnp.float32)

    out0 = bd_intervention(feature, confounder, proj=False)
    assert out0.dtype == feature.dtype
    check(out0, _ref(feature, confounder, proj=False), 1e-4, "proj=False")

    out1 = bd_intervention(feature, confounder, params=params, proj=True)
    assert out1.dtype == feature.dtype
    check(out1, _ref(feature, confounder, params=params, proj=True),
          1e-4, "proj=True")

    # --- exercise the flash kv/q tiling path (multiple kv + q blocks) ---
    B2, Nq2, Nk2 = 2, 16, 32
    f2 = jax.random.normal(kf, (B2, Nq2, embed_dim), jnp.float32)
    c2 = jax.random.normal(kc, (B2, Nk2, input_dim), jnp.float32)
    out2 = bd_intervention(f2, c2, proj=False, q_block=8, kv_block=8)
    check(out2, _ref(f2, c2, proj=False), 1e-4, "proj=False tiled")
    out3 = bd_intervention(f2, c2, params=params, proj=True,
                           q_block=8, kv_block=8)
    check(out3, _ref(f2, c2, params=params, proj=True), 1e-4, "proj=True tiled")

    # --- bf16 inputs take the bf16 MXU path with f32 accumulation ---
    f_bf = feature.astype(jnp.bfloat16)
    c_bf = confounder.astype(jnp.bfloat16)
    p_bf = make_params(jnp.bfloat16)
    out4 = bd_intervention(f_bf, c_bf, params=p_bf, proj=True)
    assert out4.dtype == jnp.bfloat16
    ref4 = _ref(f_bf.astype(jnp.float32), c_bf.astype(jnp.float32),
                params=tuple(p.astype(jnp.float32) for p in p_bf), proj=True)
    check(out4, ref4, 5e-2, "proj=True bf16")

    print("KERNEL_OK")
</pallas_src>

<mosaic_0001>
module attributes {stable_mosaic.version = 11 : i64} {
  func.func @_af_flash_kernel(%arg0: i32, %arg1: i32, %arg2: i32, %arg3: memref<1x8x32xf32, #tpu.memory_space<vmem>>, %arg4: memref<1x8x32xf32, #tpu.memory_space<vmem>>, %arg5: memref<1x8x32xf32, #tpu.memory_space<vmem>>, %arg6: memref<1x8x1xf32, #tpu.memory_space<vmem>>, %arg7: memref<1x8x1xf32, #tpu.memory_space<vmem>>, %arg8: memref<1x8x32xf32, #tpu.memory_space<vmem>>) attributes {dimension_semantics = [#tpu.dimension_semantics<parallel>, #tpu.dimension_semantics<parallel>, #tpu.dimension_semantics<arbitrary>], iteration_bounds = array<i64: 2, 1, 1>, scalar_prefetch = 0 : i64, scratch_operands = 3 : i64, tpu.core_type = #tpu.core_type<tc>, window_params = [{transform_indices = @transform_0, window_bounds = array<i64: 1, 8, 32>}, {transform_indices = @transform_1, window_bounds = array<i64: 1, 8, 32>}, {transform_indices = @transform_2, window_bounds = array<i64: 1, 8, 32>}]} {
    %c0_i32 = arith.constant 0 : i32
    %0 = arith.cmpi eq, %arg2, %c0_i32 : i32
    %1 = arith.extui %0 : i1 to i32
    %c0_i32_0 = arith.constant 0 : i32
    %2 = arith.cmpi ne, %1, %c0_i32_0 : i32
    scf.if %2 {
      %cst_33 = arith.constant 0xFF800000 : f32
      %34 = vector.broadcast %cst_33 : f32 to vector<1x8x1xf32>
      %c0_34 = arith.constant 0 : index
      %c0_35 = arith.constant 0 : index
      %c0_36 = arith.constant 0 : index
      %35 = vector.load %arg6[%c0_34, %c0_35, %c0_36] : memref<1x8x1xf32, #tpu.memory_space<vmem>>, vector<1x8x1xf32>
      tpu.vector_store %arg6[%c0_34, %c0_35, %c0_36], %34 {strides = array<i32>} : memref<1x8x1xf32, #tpu.memory_space<vmem>>, vector<1x8x1xf32>,
      %cst_37 = arith.constant 0.000000e+00 : f32
      %36 = vector.broadcast %cst_37 : f32 to vector<1x8x1xf32>
      %c0_38 = arith.constant 0 : index
      %c0_39 = arith.constant 0 : index
      %c0_40 = arith.constant 0 : index
      %37 = vector.load %arg7[%c0_38, %c0_39, %c0_40] : memref<1x8x1xf32, #tpu.memory_space<vmem>>, vector<1x8x1xf32>
      tpu.vector_store %arg7[%c0_38, %c0_39, %c0_40], %36 {strides = array<i32>} : memref<1x8x1xf32, #tpu.memory_space<vmem>>, vector<1x8x1xf32>,
      %cst_41 = arith.constant 0.000000e+00 : f32
      %38 = vector.broadcast %cst_41 : f32 to vector<1x8x32xf32>
      %c0_42 = arith.constant 0 : index
      %c0_43 = arith.constant 0 : index
      %c0_44 = arith.constant 0 : index
      %39 = vector.load %arg8[%c0_42, %c0_43, %c0_44] : memref<1x8x32xf32, #tpu.memory_space<vmem>>, vector<1x8x32xf32>
      tpu.vector_store %arg8[%c0_42, %c0_43, %c0_44], %38 {strides = array<i32>} : memref<1x8x32xf32, #tpu.memory_space<vmem>>, vector<1x8x32xf32>,
    } else {
    }
    %c0 = arith.constant 0 : index
    %c0_1 = arith.constant 0 : index
    %c0_2 = arith.constant 0 : index
    %3 = vector.load %arg3[%c0, %c0_1, %c0_2] : memref<1x8x32xf32, #tpu.memory_space<vmem>>, vector<1x8x32xf32>
    %c0_3 = arith.constant 0 : index
    %c0_4 = arith.constant 0 : index
    %c0_5 = arith.constant 0 : index
    %4 = vector.load %arg4[%c0_3, %c0_4, %c0_5] : memref<1x8x32xf32, #tpu.memory_space<vmem>>, vector<1x8x32xf32>
    "tpu.trace_start"() <{level = 10 : i32, message = "bqd,bkd->bqk"}> : () -> ()
    %cst = arith.constant dense<0.000000e+00> : vector<1x8x8xf32>
    %5 = tpu.matmul %3, %4, %cst {dimension_numbers = #tpu.dot_dimension_numbers<[2], [2], [1], [1], [0, 0, 0, 1, 1, 1], [0], [0]>} : vector<1x8x32xf32>, vector<1x8x32xf32>, vector<1x8x8xf32> -> vector<1x8x8xf32>
    "tpu.trace_stop"() : () -> ()
    %cst_6 = arith.constant 0.176776692 : f32
    %6 = vector.broadcast %cst_6 : f32 to vector<1x8x8xf32>
    %7 = arith.mulf %5, %6 : vector<1x8x8xf32>
    %c0_7 = arith.constant 0 : index
    %c0_8 = arith.constant 0 : index
    %c0_9 = arith.constant 0 : index
    %8 = vector.load %arg6[%c0_7, %c0_8, %c0_9] : memref<1x8x1xf32, #tpu.memory_space<vmem>>, vector<1x8x1xf32>
    %cst_10 = arith.constant dense<0xFF800000> : vector<1x8xf32>
    %9 = vector.multi_reduction <maximumf>, %7, %cst_10 [2] : vector<1x8x8xf32> to vector<1x8xf32>
    %10 = vector.shape_cast %9 : vector<1x8xf32> to vector<1x8x1xf32>
    %11 = arith.maximumf %8, %10 : vector<1x8x1xf32>
    %c0_11 = arith.constant 0 : index
    %c0_12 = arith.constant 0 : index
    %c0_13 = arith.constant 0 : index
    %12 = vector.load %arg6[%c0_11, %c0_12, %c0_13] : memref<1x8x1xf32, #tpu.memory_space<vmem>>, vector<1x8x1xf32>
    %13 = arith.subf %12, %11 : vector<1x8x1xf32>
    %14 = math.exp %13 : vector<1x8x1xf32>
    %15 = vector.broadcast %11 : vector<1x8x1xf32> to vector<1x8x8xf32>
    %16 = arith.subf %7, %15 : vector<1x8x8xf32>
    %17 = math.exp %16 : vector<1x8x8xf32>
    %c0_14 = arith.constant 0 : index
    %c0_15 = arith.constant 0 : index
    %c0_16 = arith.constant 0 : index
    %18 = vector.load %arg7[%c0_14, %c0_15, %c0_16] : memref<1x8x1xf32, #tpu.memory_space<vmem>>, vector<1x8x1xf32>
    %19 = arith.mulf %14, %18 : vector<1x8x1xf32>
    %cst_17 = arith.constant dense<0.000000e+00> : vector<1x8xf32>
    %20 = vector.multi_reduction <add>, %17, %cst_17 [2] : vector<1x8x8xf32> to vector<1x8xf32>
    %21 = vector.shape_cast %20 : vector<1x8xf32> to vector<1x8x1xf32>
    %22 = arith.addf %19, %21 : vector<1x8x1xf32>
    %c0_18 = arith.constant 0 : index
    %c0_19 = arith.constant 0 : index
    %c0_20 = arith.constant 0 : index
    %23 = vector.load %arg7[%c0_18, %c0_19, %c0_20] : memref<1x8x1xf32, #tpu.memory_space<vmem>>, vector<1x8x1xf32>
    tpu.vector_store %arg7[%c0_18, %c0_19, %c0_20], %22 {strides = array<i32>} : memref<1x8x1xf32, #tpu.memory_space<vmem>>, vector<1x8x1xf32>,
    %c0_21 = arith.constant 0 : index
    %c0_22 = arith.constant 0 : index
    %c0_23 = arith.constant 0 : index
    %24 = vector.load %arg8[%c0_21, %c0_22, %c0_23] : memref<1x8x32xf32, #tpu.memory_space<vmem>>, vector<1x8x32xf32>
    %25 = vector.broadcast %14 : vector<1x8x1xf32> to vector<1x8x32xf32>
    %26 = arith.mulf %25, %24 : vector<1x8x32xf32>
    "tpu.trace_start"() <{level = 10 : i32, message = "bqk,bkd->bqd"}> : () -> ()
    %cst_24 = arith.constant dense<0.000000e+00> : vector<1x8x32xf32>
    %27 = tpu.matmul %17, %4, %cst_24 {dimension_numbers = #tpu.dot_dimension_numbers<[2], [1], [1], [2], [0, 0, 0, 1, 1, 2], [0], [0]>} : vector<1x8x8xf32>, vector<1x8x32xf32>, vector<1x8x32xf32> -> vector<1x8x32xf32>
    "tpu.trace_stop"() : () -> ()
    %28 = arith.addf %26, %27 : vector<1x8x32xf32>
    %c0_25 = arith.constant 0 : index
    %c0_26 = arith.constant 0 : index
    %c0_27 = arith.constant 0 : index
    %29 = vector.load %arg8[%c0_25, %c0_26, %c0_27] : memref<1x8x32xf32, #tpu.memory_space<vmem>>, vector<1x8x32xf32>
    tpu.vector_store %arg8[%c0_25, %c0_26, %c0_27], %28 {strides = array<i32>} : memref<1x8x32xf32, #tpu.memory_space<vmem>>, vector<1x8x32xf32>,
    %c0_28 = arith.constant 0 : index
    %c0_29 = arith.constant 0 : index
    %c0_30 = arith.constant 0 : index
    %30 = vector.load %arg6[%c0_28, %c0_29, %c0_30] : memref<1x8x1xf32, #tpu.memory_space<vmem>>, vector<1x8x1xf32>
    tpu.vector_store %arg6[%c0_28, %c0_29, %c0_30], %11 {strides = array<i32>} : memref<1x8x1xf32, #tpu.memory_space<vmem>>, vector<1x8x1xf32>,
    %c0_i32_31 = arith.constant 0 : i32
    %31 = arith.cmpi eq, %arg2, %c0_i32_31 : i32
    %32 = arith.extui %31 : i1 to i32
    %c0_i32_32 = arith.constant 0 : i32
    %33 = arith.cmpi ne, %32, %c0_i32_32 : i32
    scf.if %33 {
      %c0_33 = arith.constant 0 : index
      %c0_34 = arith.constant 0 : index
      %c0_35 = arith.constant 0 : index
      %34 = vector.load %arg7[%c0_33, %c0_34, %c0_35] : memref<1x8x1xf32, #tpu.memory_space<vmem>>, vector<1x8x1xf32>
      %35 = tpu.reciprocal %34 {approx = true} : vector<1x8x1xf32> -> vector<1x8x1xf32>
      %36 = arith.mulf %34, %35 : vector<1x8x1xf32>
      %cst_36 = arith.constant 2.000000e+00 : f32
      %37 = vector.broadcast %cst_36 : f32 to vector<1x8x1xf32>
      %38 = arith.subf %37, %36 : vector<1x8x1xf32>
      %39 = arith.mulf %35, %38 : vector<1x8x1xf32>
      %c0_37 = arith.constant 0 : index
      %c0_38 = arith.constant 0 : index
      %c0_39 = arith.constant 0 : index
      %40 = vector.load %arg8[%c0_37, %c0_38, %c0_39] : memref<1x8x32xf32, #tpu.memory_space<vmem>>, vector<1x8x32xf32>
      %41 = vector.broadcast %39 : vector<1x8x1xf32> to vector<1x8x32xf32>
      %42 = arith.mulf %40, %41 : vector<1x8x32xf32>
      %c0_40 = arith.constant 0 : index
      %c0_41 = arith.constant 0 : index
      %c0_42 = arith.constant 0 : index
      %43 = vector.load %arg5[%c0_40, %c0_41, %c0_42] : memref<1x8x32xf32, #tpu.memory_space<vmem>>, vector<1x8x32xf32>
      tpu.vector_store %arg5[%c0_40, %c0_41, %c0_42], %42 {strides = array<i32>} : memref<1x8x32xf32, #tpu.memory_space<vmem>>, vector<1x8x32xf32>,
    } else {
    }
    return
  }
  func.func @transform_0(%arg0: i32, %arg1: i32, %arg2: i32) -> (i32, i32, i32) {
    %c0_i32 = arith.constant 0 : i32
    %c0_i32_0 = arith.constant 0 : i32
    return %arg0, %arg1, %c0_i32 : i32, i32, i32
  }
  func.func @transform_1(%arg0: i32, %arg1: i32, %arg2: i32) -> (i32, i32, i32) {
    %c0_i32 = arith.constant 0 : i32
    %c0_i32_0 = arith.constant 0 : i32
    return %arg0, %arg2, %c0_i32 : i32, i32, i32
  }
  func.func @transform_2(%arg0: i32, %arg1: i32, %arg2: i32) -> (i32, i32, i32) {
    %c0_i32 = arith.constant 0 : i32
    %c0_i32_0 = arith.constant 0 : i32
    return %arg0, %arg1, %c0_i32 : i32, i32, i32
  }
}

</mosaic_0001>

<bundles_post_ra>
// kernel: tpu_custom_call.1
= control target key start
LH: loop header
LB: loop body
LE: loop exit
PB: predicated region body
PF: predicated region fallthrough
CT: control target
= control target key end

     0   :  { %7 = vsyncpa [#allocation6], 0  ;;  %s1077_s0 = inlined_call_operand.hbm [shape: f32[2,8,32], index: 0, kind: input, shape index: {}]   ;;  %s1078_s1 = inlined_call_operand.hbm [shape: f32[2,8,32], index: 1, kind: input, shape index: {}]   ;;  %s1079_s2 = inlined_call_operand.hbm [shape: f32[2,8,32], index: 2, kind: output, shape index: {}]  }
   0x1   :  { %9 = vsyncpa [#allocation6 + $0x1], 0 }
   0x2   :  { %10 = vsyncpa [#allocation9], 0 }
   0x3   :  { %12 = vsyncpa [#allocation9 + $0x1], 0 }
   0x4   :  { %13 = vsyncpa [#allocation7], 0 }
   0x5   :  { %15 = vsyncpa [#allocation7 + $0x1], 0  ;;  %s840_s9 = smov 0   ;;  %s842_s10 = smov 0  }
   0x6   :  { %s844_s11 = smov 0   ;;  %s846_s12 = smov 0  }
   0x7   :  { %s848_s13 = smov 0   ;;  %s850_s14 = smov 0  }
   0x8 LB: > { %s558_s15 = sadd.s32 4294967295, %s816_s14   ;;  %s559_s16 = sadd.s32 4294967294, %s816_s14   ;;  %s816_s14 = sphi %s850_s14, %s21_s14   ;;  %s812_s13 = sphi %s848_s13, %s1099_s13   ;;  %s808_s12 = sphi %s846_s12, %s1098_s12   ;;  %s804_s11 = sphi %s844_s11, %s1097_s11   ;;  %s800_s10 = sphi %s842_s10, %s1096_s10   ;;  %s796_s9 = sphi %s840_s9, %s1095_s9  }
   0x9   : > { %s40_s17 = sadd.s32 1, %s812_s13  ;;  %s49_s18 = sadd.s32 1, %s804_s11 }
   0xa   : > { %p42_p0 = scmp.ge.s32.totalorder %s40_s17, 2  ;;  %p56_p1 = scmp.ne.s32.totalorder %s804_s11, %s800_s10 }
   0xb   : > { %p57_p2 = scmp.eq.s32.totalorder %s816_s14, 0  ;;  %p62_p3 = scmp.ne.s32.totalorder %s800_s10, %s796_s9 }
   0xc   : > { %s1101_s17 = smov (%p42_p0, %s40_s17), 0  ;;  %p63_p5 = scmp.eq.s32.totalorder %s558_s15, 0 }
   0xd   : > { %p881_p4 = por %p57_p2, %p56_p1  ;;  %s44_s20 = ssub.s32 %s812_s13, %s1101_s17 }
   0xe   : > { %p116_p6 = scmp.eq.s32.totalorder %s558_s15, 1  ;;  %p47_p7 = scmp.eq.s32.totalorder %s44_s20, 0 }
   0xf   : > { %p887_p8 = por %p63_p5, %p62_p3  ;;  %p122_p10 = scmp.eq.s32.totalorder %s559_s16, 1 }
  0x10   : > { %p891_p9 = por %p116_p6, %p56_p1  ;;  %p608_p13 = scmp.lt.s32.totalorder %s816_s14, 2 }
  0x11   : > { %s1083_s21 = scalar_select %p887_p8, 1, 0 }
  0x12   : > { %s1084_s22 = scalar_select %p891_p9, 1, 0 }
  0x13   : > { %s896_s23 = scalar_select %p47_p7, %s804_s11, %s49_s18  }
  0x14   : > { %p898_p11 = por %p122_p10, %p62_p3  ;;  %s905_s25 = sand.u32 1, %s804_s11  }
  0x15   : > { %s562_s26 = sshll.u32 %s905_s25, 3  ;;  %s563_s27 = sshll.u32 %s812_s13, 7 }
  0x16   : > { %s1085_s24 = scalar_select %p898_p11, 1, 0 }
  0x17   : > { %s914_s30 = scalar_lea.hbm %s1077_s0, %s563_s27  ;;  %s146_s3 = scalar_lea.vmem [#allocation5], %s562_s26 }
  0x18   : > { %s154_s4 = sshll.u32 %s146_s3, 4  ;;  %p922_p0 = pnand %p608_p13, %p881_p4  ;;  %s918_s4 = int_to_ptr.vmem [resolvable:$true] %s154_s4 }
  0x19   : > { %s143_s6 = scalar_lea.sflag [#allocation6], %s905_s25  ;;  %s670_s7 = scalar_lea.hbm %s914_s30, 128 }
  0x1a   : > { %p671_p3 = scmp.ne.s32.totalorder %s914_s30, %s670_s7  ;;  %p672_p5 = pneg %p922_p0 }
  0x1b   : > { %s675_s16 = scalar_lea.hbm %s1077_s0, 256  ;;  %p676_p4 = scmp.lt.u32.totalorder %s914_s30, %s1077_s0 }
  0x1c   : > { %p673_p6 = pnand %p672_p5, %p671_p3  ;;  %p677_p10 = scmp.lt.u32.totalorder %s675_s16, %s670_s7 }
  0x1d   : > { %p679_p12 = scmp.lt.u32.totalorder %s670_s7, %s914_s30 }
  0x1e   : > { %p674_p7 = pneg %p673_p6  ;;  %p678_p13 = por %p677_p10, %p676_p4 }
  0x20   : > { %p680_p1 = por %p679_p12, %p678_p13 }
  0x22   : > { %p681_p2 = pnand %p680_p1, %p674_p7 }
  0x24   : > { %684 = shalt.err (!%p681_p2)
}
  0x25   : > { %s685_s20 = scalar_lea.vmem %s918_s4, 128  ;;  %s818_s28 = smov [#allocation5]  }
  0x26   : > { %p686_p3 = scmp.ne.s32.totalorder %s918_s4, %s685_s20  ;;  %s690_s29 = sshll.u32 %s818_s28, 4  ;;  %s691_s29 = int_to_ptr.vmem [resolvable:$false] %s690_s29 }
  0x27   : > { %s692_s3 = scalar_lea.vmem %s691_s29, 256  ;;  %p693_p9 = scmp.lt.s32.totalorder %s918_s4, %s691_s29 }
  0x28   : > { %p688_p6 = pnand %p686_p3, %p672_p5  ;;  %p694_p4 = scmp.lt.s32.totalorder %s692_s3, %s685_s20 }
  0x2a   : > { %p689_p11 = pneg %p688_p6  ;;  %p695_p10 = por %p694_p4, %p693_p9 }
  0x2c   : > { %p696_p12 = pnand %p695_p10, %p689_p11 }
  0x2e   : > { %699 = shalt.err (!%p696_p12)
}
  0x2f   : > { %600 = dma.hbm_to_vmem [thread:$0]  (!%p922_p0), %s914_s30, 128, %s918_s4, %s143_s6  }
  0x30   : > { %p1087_p1 = scmp.lt.s32.totalorder %s816_s14, 3  ;;  %p1088_p2 = scmp.ge.s32.totalorder %s816_s14, 1 }
  0x31   : > { %s967_s16 = scalar_lea.hbm %s1078_s1, %s563_s27  ;;  %s165_s18 = scalar_lea.vmem [#allocation8], %s562_s26 }
  0x32   : > { %p958_p7 = pnand %p1088_p2, %p1087_p1  ;;  %s173_s19 = sshll.u32 %s165_s18, 4  ;;  %s174_s19 = int_to_ptr.vmem [resolvable:$true] %s173_s19 }
  0x33   : > { %s162_s30 = scalar_lea.sflag [#allocation9], %s905_s25  ;;  %s700_s4 = scalar_lea.hbm %s967_s16, 128 }
  0x34   : > { %s1089_s7 = scalar_select %p958_p7, 1, 0 }
  0x35   : > { %p701_p9 = scmp.ne.s32.totalorder %s967_s16, %s700_s4  ;;  %s705_s27 = scalar_lea.hbm %s1078_s1, 256 }
  0x36   : > { %p706_p3 = scmp.lt.u32.totalorder %s967_s16, %s1078_s1  ;;  %p707_p6 = scmp.lt.u32.totalorder %s705_s27, %s700_s4 }
  0x37   : > { %p703_p11 = pnand %p701_p9, %p672_p5  ;;  %p709_p10 = scmp.lt.u32.totalorder %s700_s4, %s967_s16 }
  0x38   : > { %p708_p4 = por %p707_p6, %p706_p3 }
  0x39   : > { %p704_p13 = pneg %p703_p11 }
  0x3a   : > { %p710_p12 = por %p709_p10, %p708_p4 }
  0x3c   : > { %p711_p1 = pnand %p710_p12, %p704_p13 }
  0x3e   : > { %714 = shalt.err (!%p711_p1)
}
  0x3f   : > { %s715_s25 = scalar_lea.vmem %s174_s19, 128  ;;  %s819_s26 = smov [#allocation8]  }
  0x40   : > { %p716_p2 = scmp.ne.s32.totalorder %s174_s19, %s715_s25  ;;  %s720_s3 = sshll.u32 %s819_s26, 4  ;;  %s721_s3 = int_to_ptr.vmem [resolvable:$false] %s720_s3 }
  0x41   : > { %s722_s8 = scalar_lea.vmem %s721_s3, 256  ;;  %p723_p8 = scmp.lt.s32.totalorder %s174_s19, %s721_s3 }
  0x42   : > { %p718_p9 = pnand %p716_p2, %p672_p5  ;;  %p724_p7 = scmp.lt.s32.totalorder %s722_s8, %s715_s25 }
  0x44   : > { %p719_p11 = pneg %p718_p9  ;;  %p725_p3 = por %p724_p7, %p723_p8 }
  0x46   : > { %p726_p6 = pnand %p725_p3, %p719_p11 }
  0x48   : > { %729 = shalt.err (!%p726_p6)
}
  0x49   : > { %603 = dma.hbm_to_vmem [thread:$0]  (!%p922_p0), %s967_s16, 128, %s174_s19, %s162_s30  }
  0x4a   : > { %p1090_p13 = scmp.ne.s32.totalorder %s1089_s7, 0 }
  0x4b   : > { %s994_s15 = sand.u32 (!%p1090_p13), 1, %s800_s10   ;;  %p1091_p8 = scmp.ne.s32.totalorder (!%p1090_p13), %s1083_s21, 0 }
  0x4c   : > { %182 = sbr.rel (%p1090_p13) target bundleno = 908 (0x38c), region = 28  ;;  %s997_s18 = sshll.u32 (!%p1090_p13), %s994_s15, 3 }
  0x4d   : > { %s185_s4 = scalar_lea.sflag (!%p1090_p13), [#allocation6], %s994_s15  ;;  %s188_s6 = scalar_lea.vmem (!%p1090_p13), [#allocation5], %s997_s18 }
  0x53   : > { %783 = dma.done.wait (%p1091_p8), %s185_s4, 128  }
  0x54   : > { %785 = vsyncadd (%p1091_p8), %s185_s4, 4294967168  ;;  %s194_s5 = scalar_lea.sflag [#allocation9], %s994_s15  ;;  %s197_s7 = scalar_lea.vmem [#allocation8], %s997_s18 }
  0x55   : > { %787 = dma.done.wait (%p1091_p8), %s194_s5, 128  }
  0x56   : > { %789 = vsyncadd (%p1091_p8), %s194_s5, 4294967168  ;;  %vm230_vm0 = vcmask 261120   ;;  %v820_v0 = vmov 0.0   ;;  %vm821_vm1 = vmmov 0   ;;  %v233_v1 = vld [vmem:[%s197_s7] sm:$0xff]  ;;  %v232_v2 = vld [vmem:[%s188_s6] sm:$0xff] }
  0x57   : > { %581 = vmatprep.subr.mxu0 %v820_v0  ;;  %231 = vst.msk [vmem:[#allocation4] sm:$0xff] %vm230_vm0, %v820_v0  ;;  %583 = vmatprep.mubr.msk.f32.mxu0 %vm821_vm1, %v820_v0  ;;  %vm227_vm2 = vcmask 7168   ;;  %v822_v3 = vmov -inf   ;;  %vm313_vm3 = vcmask 64512   ;;  %v823_v8 = vmov 0   ;;  %s574_s21 = sshll.u32 %s808_s12, 7 }
  0x58   : > { %586 = vmatprep.subr.mxu1 %v820_v0  ;;  %588 = vmatprep.mubr.msk.f32.mxu1 %vm821_vm1, %v820_v0  ;;  %228 = vst.msk [vmem:[#allocation2] sm:$0xff] %vm227_vm2, %v822_v3  ;;  %229 = vst.msk [vmem:[#allocation3] sm:$0xff] %vm227_vm2, %v820_v0  ;;  %s222_s16 = scalar_lea.vmem [#allocation10], %s997_s18  ;;  %s1027_s27 = scalar_lea.hbm %s1079_s2, %s574_s21 }
  0x59   : > { %582 = vmatpush3.xpose.msk.msra.mxu0 %vm230_vm0, %v233_v1  ;;  %587 = vmatpush3.msra.mxu1 %v233_v1  ;;  %s451_s19 = sshll.u32 %s222_s16, 4  ;;  %s437_s28 = scalar_lea.sflag [#allocation7], %s994_s15  ;;  %s1029_s19 = int_to_ptr.vmem [resolvable:$true] %s451_s19 }
  0x5a   : > { %662 = vset.pattern.permute.xlu0 %v823_v8  ;;  %663 = vset.pattern.permute.xlu1 %v823_v8  ;;  %s730_s29 = scalar_lea.vmem %s1029_s19, 128  ;;  %p1092_p5 = scmp.ne.s32.totalorder %s1084_s22, 0 }
  0x5b   : > { %p731_p0 = scmp.ne.s32.totalorder %s1029_s19, %s730_s29  ;;  %s824_s12 = smov [#allocation10]  }
  0x5c   : > { %584 = vmatmul.mubr.msk.f32.vlgmr.msra.gmra.mrb[0].mxu0 %vm230_vm0, %v232_v2  ;;  %s734_s25 = sshll.u32 %s824_s12, 4  ;;  %s735_s25 = int_to_ptr.vmem [resolvable:$false] %s734_s25 }
  0x5d   : > { %p732_p7 = pnand %p731_p0, %p1092_p5  ;;  %s736_s26 = scalar_lea.vmem %s735_s25, 256 }
  0x5e   : > { %v337_v29 = vld [vmem:[#allocation4] sm:$0xff]  ;;  %p737_p10 = scmp.lt.s32.totalorder %s1029_s19, %s735_s25  ;;  %p738_p12 = scmp.lt.s32.totalorder %s736_s26, %s730_s29 }
  0x5f   : > { %v312_v9 = vld [vmem:[#allocation2] sm:$0xff]  ;;  %v329_v20 = vld [vmem:[#allocation3] sm:$0xff]  ;;  %p733_p4 = pneg %p732_p7 }
  0x60   : > { %p739_p1 = por %p738_p12, %p737_p10 }
  0x62   : > { %p740_p2 = pnand %p739_p1, %p733_p4 }
 0x12f   : > { %v307_v4 = vpop.f32.mrb[0].mxu0 }
 0x130   : > { %v311_v5 = vmul.f32 0.17677669, %v307_v4  ;;  %v585_v6 = vpop.f32.mrb[1].mxu0 }
 0x132   : > { %v314_v7 = vsel %vm313_vm3, %v311_v5, -inf }
 0x133   : > { %315 = vmax.xlane.f32.xlu0 %v314_v7 }
 0x1c0   : > { %v316_v10 = vpop.xlane.xlu0 %315 }
 0x1c1   : > { %v317_v11 = vmax.f32 %v312_v9, %v316_v10 }
 0x1c3   : > { %v318_v12 = vsub.f32 %v312_v9, %v317_v11  ;;  %419 = vst.msk [vmem:[#allocation2] sm:$0xff] %vm227_vm2, %v317_v11  ;;  %323 = vperm.xlu0 %662, %v317_v11  }
 0x1c5   : > { %v319_v18 = vmul.f32 1.442695, %v318_v12 }
 0x242   : > { %v324_v13 = vpop.permute.xlu0 %323 }
 0x243   : > { %v326_v14 = vsub.f32 %v311_v5, %v324_v13 }
 0x245   : > { %v327_v15 = vmul.f32 1.442695, %v326_v14 }
 0x247   : > { %664 = vpow2.f32 %v327_v15 }
 0x248   : > { %666 = vpow2.f32 %v319_v18 }
 0x251   : > { %v665_v16 = vpop.eup %664 }
 0x252   : > { %589 = vmatmul.mubr.msk.f32.vlgmr.msra.gmra.mrb[0].mxu1 %vm313_vm3, %v665_v16  ;;  %v331_v17 = vsel %vm313_vm3, %v665_v16, 0.0  ;;  %v667_v19 = vpop.eup %666 }
 0x253   : > { %332 = vadd.xlane.f32.xlu1 %v331_v17  ;;  %v330_v21 = vmul.f32 %v667_v19, %v329_v20 }
 0x264   : > { %340 = vperm.xlu1 %663, %v667_v19  }
 0x2e0   : > { %v333_v22 = vpop.xlane.xlu1 %332 }
 0x2e1   : > { %v334_v23 = vadd.f32 %v333_v22, %v330_v21 }
 0x2e3   : > { %336 = vst.msk [vmem:[#allocation3] sm:$0xff] %vm227_vm2, %v334_v23 }
 0x2e4   : > { %v341_v30 = vpop.permute.xlu1 %340 }
 0x2e5   : > { %v343_v31 = vmul.f32 %v341_v30, %v337_v29 }
 0x2ea   : > { %v423_v24 = vld [vmem:[#allocation3] sm:$0xff] }
 0x2eb   : > { %668 = vrcp.f32 %v423_v24 }
 0x2f5   : > { %v669_v25 = vpop.eup %668 }
 0x2f6   : > { %v425_v26 = vmul.f32 %v669_v25, %v423_v24 }
 0x2f8   : > { %v426_v27 = vsub.f32 2.0, %v425_v26 }
 0x2fa   : > { %v427_v28 = vmul.f32 %v669_v25, %v426_v27 }
 0x2fc   : > { %431 = vperm.xlu1 %663, %v427_v28  }
 0x325   : > { %v413_v32 = vpop.f32.mrb[0].mxu1 }
 0x326   : > { %v417_v33 = vadd.f32 %v413_v32, %v343_v31  ;;  %v590_v34 = vpop.f32.mrb[1].mxu1 }
 0x328   : > { %418 = vst.msk [vmem:[#allocation4] sm:$0xff] %vm230_vm0, %v417_v33 }
 0x32f   : > { %v428_v35 = vld [vmem:[#allocation4] sm:$0xff] }
 0x37b   : > { %v432_v36 = vpop.permute.xlu1 %431 }
 0x37c   : > { %v434_v37 = vmul.f32 %v432_v36, %v428_v35 }
 0x37e   : > { %435 = vst.msk [vmem:[%s222_s16] sm:$0xff] %vm230_vm0, %v434_v37 }
 0x37f   : > { %743 = shalt.err (!%p740_p2)
}
 0x380   : > { %s744_s3 = scalar_lea.hbm %s1027_s27, 128  ;;  %s748_s18 = scalar_lea.hbm %s1079_s2, 256 }
 0x381   : > { %p745_p9 = scmp.ne.s32.totalorder %s1027_s27, %s744_s3  ;;  %p749_p6 = scmp.lt.u32.totalorder %s1027_s27, %s1079_s2 }
 0x382   : > { %p750_p13 = scmp.lt.u32.totalorder %s748_s18, %s744_s3  ;;  %p752_p0 = scmp.lt.u32.totalorder %s744_s3, %s1027_s27 }
 0x383   : > { %p746_p11 = pnand %p745_p9, %p1092_p5 }
 0x384   : > { %p751_p8 = por %p750_p13, %p749_p6 }
 0x385   : > { %p747_p3 = pneg %p746_p11 }
 0x386   : > { %p753_p7 = por %p752_p0, %p751_p8 }
 0x388   : > { %p754_p4 = pnand %p753_p7, %p747_p3 }
 0x38a   : > { %757 = shalt.err (!%p754_p4)
}
 0x38b   : > { %595 = dma.vmem_to_hbm [thread:$0]  (%p1092_p5), %s1029_s19, 128, %s1027_s27, %s437_s28  }
 0x38c PF: > { %s463_s5 = sand.u32 1, %s796_s9   ;;  %p1093_p10 = scmp.ne.s32.totalorder %s1085_s24, 0 }
 0x38d   : > { %p1094_p12 = scmp.ge.s32.totalorder %s816_s14, 2  ;;  %s464_s7 = scalar_lea.sflag [#allocation7], %s463_s5 }
 0x38f   : > { %p605_p1 = pnand %p1094_p12, %p1093_p10 }
 0x391   : > { %791 = dma.done.wait (!%p605_p1), %s464_s7, 128  }
 0x392   : > { %793 = vsyncadd (!%p605_p1), %s464_s7, 4294967168  ;;  %s21_s14 = sadd.s32 1, %s816_s14   ;;  %s1095_s9 = smov %s800_s10 }
 0x393   : > { %p18_p2 = scmp.ge.s32.totalorder %s21_s14, 4   ;;  %s1096_s10 = smov %s804_s11 }
 0x394   : > { %s1097_s11 = smov %s896_s23  ;;  %s1098_s12 = smov %s812_s13 }
 0x395   : > { %s1099_s13 = smov %s1101_s17  ;;  %20 = sbr.rel (!%p18_p2) target bundleno = 8 (0x8), region = 94 }
 0x39c   :  { %469 = vsyncpa [#allocation6], 1 }
 0x39d   :  { %471 = vsyncpa [#allocation6 + $0x1], 1 }
 0x39e   :  { %472 = vsyncpa [#allocation9], 1 }
 0x39f   :  { %474 = vsyncpa [#allocation9 + $0x1], 1 }
 0x3a0   :  { %475 = vsyncpa [#allocation7], 1 }
 0x3a1   :  { %477 = vsyncpa [#allocation7 + $0x1], 1 }

</bundles_post_ra>
